<compile_context>
chip_gen: v7x
topology: tpu7x:2x2x1
jax: 0.10.0
libtpu: 0.0.40
codegen_flags: <defaults>
</compile_context>

<pallas_src>
import math

import jax
import jax.numpy as jnp
from jax.experimental import pallas as pl
from jax.experimental.pallas import tpu as pltpu

LN_EPS = 1e-5


def feed_forward_kernel(x_ref, w1_ref, b1_ref, w2_ref, b2_ref,
                        gamma_ref, beta_ref, out_ref):
    x = x_ref[...].astype(jnp.float32)                        # (tm, D)

    # --- LayerNorm over the hidden (lane) dim --------------------------------
    mean = jnp.mean(x, axis=-1, keepdims=True)                # (tm, 1)
    xc = x - mean
    var = jnp.mean(xc * xc, axis=-1, keepdims=True)           # biased, as PyTorch
    ln = xc * jax.lax.rsqrt(var + LN_EPS)                     # EUP rsqrt
    ln = ln * gamma_ref[...] + beta_ref[...]                  # (1, D) broadcasts

    # --- Linear1 + ReLU (weights pre-transposed; contract on lane axis) ------
    h = jnp.dot(ln, w1_ref[...], preferred_element_type=jnp.float32) + b1_ref[...]
    h = jnp.maximum(h, 0.0)

    # --- Linear2 --------------------------------------------------------------
    y = jnp.dot(h, w2_ref[...], preferred_element_type=jnp.float32) + b2_ref[...]

    # TODO(synk): nn.Dropout(p_dropout) omitted (eval-mode identity).
    out_ref[...] = (y + x).astype(out_ref.dtype)              # skip connection


def feed_forward(x, w1, b1, w2, b2, gamma, beta, *, block_rows=256):
    """x: (B, T, D). w1/w2 are PyTorch nn.Linear weights of shape (D, D)."""
    B, T, D = x.shape
    R = B * T

    # Row-block size: multiple of 8 (sublane), capped at block_rows.
    tm = min(block_rows, R)
    tm = max(8, (tm // 8) * 8)
    R_pad = pl.cdiv(R, tm) * tm

    xr = x.reshape(R, D)
    if R_pad != R:
        xr = jnp.pad(xr, ((0, R_pad - R), (0, 0)))

    # Pre-transpose so the kernel computes act @ Wt  ==  act @ W.T (no in-kernel .T).
    w1t = w1.T
    w2t = w2.T
    b1r = b1.reshape(1, D)
    b2r = b2.reshape(1, D)
    gammar = gamma.reshape(1, D)
    betar = beta.reshape(1, D)

    grid_spec = pltpu.PrefetchScalarGridSpec(
        num_scalar_prefetch=0,
        grid=(R_pad // tm,),
        in_specs=[
            pl.BlockSpec((tm, D), lambda i: (i, 0)),   # x row block
            pl.BlockSpec((D, D), lambda i: (0, 0)),    # W1^T (resident)
            pl.BlockSpec((1, D), lambda i: (0, 0)),    # b1
            pl.BlockSpec((D, D), lambda i: (0, 0)),    # W2^T (resident)
            pl.BlockSpec((1, D), lambda i: (0, 0)),    # b2
            pl.BlockSpec((1, D), lambda i: (0, 0)),    # gamma
            pl.BlockSpec((1, D), lambda i: (0, 0)),    # beta
        ],
        out_specs=pl.BlockSpec((tm, D), lambda i: (i, 0)),
    )

    out = pl.pallas_call(
        feed_forward_kernel,
        out_shape=jax.ShapeDtypeStruct((R_pad, D), x.dtype),
        grid_spec=grid_spec,
        compiler_params=pltpu.CompilerParams(
            dimension_semantics=("parallel",)),
    )(xr, w1t, b1r, w2t, b2r, gammar, betar)

    return out[:R].reshape(B, T, D)


def feed_forward_ref(x, w1, b1, w2, b2, gamma, beta):
    """Pure-JAX reference mirroring the PyTorch forward (eval mode)."""
    mean = jnp.mean(x, axis=-1, keepdims=True)
    var = jnp.mean((x - mean) ** 2, axis=-1, keepdims=True)
    ln = (x - mean) * jax.lax.rsqrt(var + LN_EPS) * gamma + beta
    h = jax.nn.relu(jnp.matmul(ln, w1.T) + b1)
    y = jnp.matmul(h, w2.T) + b2
    return y + x


if __name__ == "__main__":
    B, T, D = 2, 8, 32

    key = jax.random.PRNGKey(0)
    kx, kw1, kb1, kw2, kb2 = jax.random.split(key, 5)

    x = jax.random.normal(kx, (B, T, D), dtype=jnp.float32)

    # PyTorch nn.Linear default init: U(-1/sqrt(in_dim), 1/sqrt(in_dim)).
    bound = 1.0 / math.sqrt(D)
    w1 = jax.random.uniform(kw1, (D, D), minval=-bound, maxval=bound,
                            dtype=jnp.float32)
    b1 = jax.random.uniform(kb1, (D,), minval=-bound, maxval=bound,
                            dtype=jnp.float32)
    w2 = jax.random.uniform(kw2, (D, D), minval=-bound, maxval=bound,
                            dtype=jnp.float32)
    b2 = jax.random.uniform(kb2, (D,), minval=-bound, maxval=bound,
                            dtype=jnp.float32)
    # nn.LayerNorm default affine params.
    gamma = jnp.ones((D,), dtype=jnp.float32)
    beta = jnp.zeros((D,), dtype=jnp.float32)

    out = feed_forward(x, w1, b1, w2, b2, gamma, beta)
    out = jax.block_until_ready(out)

    ref = feed_forward_ref(x, w1, b1, w2, b2, gamma, beta)
    assert out.shape == (B, T, D), out.shape
    assert jnp.allclose(out, ref, atol=1e-3, rtol=1e-3), \
        float(jnp.max(jnp.abs(out - ref)))

    print("KERNEL_OK")
</pallas_src>

<mosaic_0001>
module attributes {stable_mosaic.version = 11 : i64} {
  func.func @feed_forward_kernel(%arg0: i32, %arg1: memref<16x32xf32, #tpu.memory_space<vmem>>, %arg2: memref<32x32xf32, #tpu.memory_space<vmem>>, %arg3: memref<1x32xf32, #tpu.memory_space<vmem>>, %arg4: memref<32x32xf32, #tpu.memory_space<vmem>>, %arg5: memref<1x32xf32, #tpu.memory_space<vmem>>, %arg6: memref<1x32xf32, #tpu.memory_space<vmem>>, %arg7: memref<1x32xf32, #tpu.memory_space<vmem>>, %arg8: memref<16x32xf32, #tpu.memory_space<vmem>>) attributes {dimension_semantics = [#tpu.dimension_semantics<parallel>], iteration_bounds = array<i64: 1>, scalar_prefetch = 0 : i64, scratch_operands = 0 : i64, tpu.core_type = #tpu.core_type<tc>, window_params = [{transform_indices = @transform_0, window_bounds = array<i64: 16, 32>}, {pipeline_mode = #tpu.pipeline_mode<synchronous>, transform_indices = @transform_1, window_bounds = array<i64: 32, 32>}, {pipeline_mode = #tpu.pipeline_mode<synchronous>, transform_indices = @transform_2, window_bounds = array<i64: 1, 32>}, {pipeline_mode = #tpu.pipeline_mode<synchronous>, transform_indices = @transform_3, window_bounds = array<i64: 32, 32>}, {pipeline_mode = #tpu.pipeline_mode<synchronous>, transform_indices = @transform_4, window_bounds = array<i64: 1, 32>}, {pipeline_mode = #tpu.pipeline_mode<synchronous>, transform_indices = @transform_5, window_bounds = array<i64: 1, 32>}, {pipeline_mode = #tpu.pipeline_mode<synchronous>, transform_indices = @transform_6, window_bounds = array<i64: 1, 32>}, {transform_indices = @transform_7, window_bounds = array<i64: 16, 32>}]} {
    %c0 = arith.constant 0 : index
    %c0_0 = arith.constant 0 : index
    %0 = vector.load %arg1[%c0, %c0_0] : memref<16x32xf32, #tpu.memory_space<vmem>>, vector<16x32xf32>
    %cst = arith.constant dense<0.000000e+00> : vector<16xf32>
    %1 = vector.multi_reduction <add>, %0, %cst [1] : vector<16x32xf32> to vector<16xf32>
    %2 = vector.shape_cast %1 : vector<16xf32> to vector<16x1xf32>
    %cst_1 = arith.constant 3.200000e+01 : f32
    %3 = vector.broadcast %cst_1 : f32 to vector<16x1xf32>
    %4 = arith.divf %2, %3 : vector<16x1xf32>
    %5 = vector.broadcast %4 : vector<16x1xf32> to vector<16x32xf32>
    %6 = arith.subf %0, %5 : vector<16x32xf32>
    %7 = arith.mulf %6, %6 : vector<16x32xf32>
    %cst_2 = arith.constant dense<0.000000e+00> : vector<16xf32>
    %8 = vector.multi_reduction <add>, %7, %cst_2 [1] : vector<16x32xf32> to vector<16xf32>
    %9 = vector.shape_cast %8 : vector<16xf32> to vector<16x1xf32>
    %cst_3 = arith.constant 3.200000e+01 : f32
    %10 = vector.broadcast %cst_3 : f32 to vector<16x1xf32>
    %11 = arith.divf %9, %10 : vector<16x1xf32>
    %cst_4 = arith.constant 9.99999974E-6 : f32
    %12 = vector.broadcast %cst_4 : f32 to vector<16x1xf32>
    %13 = arith.addf %11, %12 : vector<16x1xf32>
    %14 = math.rsqrt %13 : vector<16x1xf32>
    %15 = vector.broadcast %14 : vector<16x1xf32> to vector<16x32xf32>
    %16 = arith.mulf %6, %15 : vector<16x32xf32>
    %c0_5 = arith.constant 0 : index
    %c0_6 = arith.constant 0 : index
    %17 = vector.load %arg6[%c0_5, %c0_6] : memref<1x32xf32, #tpu.memory_space<vmem>>, vector<1x32xf32>
    %18 = vector.broadcast %17 : vector<1x32xf32> to vector<16x32xf32>
    %19 = arith.mulf %16, %18 : vector<16x32xf32>
    %c0_7 = arith.constant 0 : index
    %c0_8 = arith.constant 0 : index
    %20 = vector.load %arg7[%c0_7, %c0_8] : memref<1x32xf32, #tpu.memory_space<vmem>>, vector<1x32xf32>
    %21 = vector.broadcast %20 : vector<1x32xf32> to vector<16x32xf32>
    %22 = arith.addf %19, %21 : vector<16x32xf32>
    %c0_9 = arith.constant 0 : index
    %c0_10 = arith.constant 0 : index
    %23 = vector.load %arg2[%c0_9, %c0_10] : memref<32x32xf32, #tpu.memory_space<vmem>>, vector<32x32xf32>
    %cst_11 = arith.constant dense<0.000000e+00> : vector<16x32xf32>
    %24 = tpu.matmul %22, %23, %cst_11 {dimension_numbers = #tpu.dot_dimension_numbers<[1], [0], [0], [1], [0, 0, 1, 1], [], []>} : vector<16x32xf32>, vector<32x32xf32>, vector<16x32xf32> -> vector<16x32xf32>
    %c0_12 = arith.constant 0 : index
    %c0_13 = arith.constant 0 : index
    %25 = vector.load %arg3[%c0_12, %c0_13] : memref<1x32xf32, #tpu.memory_space<vmem>>, vector<1x32xf32>
    %26 = vector.broadcast %25 : vector<1x32xf32> to vector<16x32xf32>
    %27 = arith.addf %24, %26 : vector<16x32xf32>
    %cst_14 = arith.constant 0.000000e+00 : f32
    %28 = vector.broadcast %cst_14 : f32 to vector<16x32xf32>
    %29 = arith.maximumf %27, %28 : vector<16x32xf32>
    %c0_15 = arith.constant 0 : index
    %c0_16 = arith.constant 0 : index
    %30 = vector.load %arg4[%c0_15, %c0_16] : memref<32x32xf32, #tpu.memory_space<vmem>>, vector<32x32xf32>
    %cst_17 = arith.constant dense<0.000000e+00> : vector<16x32xf32>
    %31 = tpu.matmul %29, %30, %cst_17 {dimension_numbers = #tpu.dot_dimension_numbers<[1], [0], [0], [1], [0, 0, 1, 1], [], []>} : vector<16x32xf32>, vector<32x32xf32>, vector<16x32xf32> -> vector<16x32xf32>
    %c0_18 = arith.constant 0 : index
    %c0_19 = arith.constant 0 : index
    %32 = vector.load %arg5[%c0_18, %c0_19] : memref<1x32xf32, #tpu.memory_space<vmem>>, vector<1x32xf32>
    %33 = vector.broadcast %32 : vector<1x32xf32> to vector<16x32xf32>
    %34 = arith.addf %31, %33 : vector<16x32xf32>
    %35 = arith.addf %34, %0 : vector<16x32xf32>
    %c0_20 = arith.constant 0 : index
    %c0_21 = arith.constant 0 : index
    %36 = vector.load %arg8[%c0_20, %c0_21] : memref<16x32xf32, #tpu.memory_space<vmem>>, vector<16x32xf32>
    tpu.vector_store %arg8[%c0_20, %c0_21], %35 {strides = array<i32>} : memref<16x32xf32, #tpu.memory_space<vmem>>, vector<16x32xf32>,
    return
  }
  func.func @transform_0(%arg0: i32) -> (i32, i32) {
    %c0_i32 = arith.constant 0 : i32
    %c0_i32_0 = arith.constant 0 : i32
    return %arg0, %c0_i32 : i32, i32
  }
  func.func @transform_1(%arg0: i32) -> (i32, i32) {
    %c0_i32 = arith.constant 0 : i32
    %c0_i32_0 = arith.constant 0 : i32
    %c0_i32_1 = arith.constant 0 : i32
    return %c0_i32, %c0_i32_0 : i32, i32
  }
  func.func @transform_2(%arg0: i32) -> (i32, i32) {
    %c0_i32 = arith.constant 0 : i32
    %c0_i32_0 = arith.constant 0 : i32
    %c0_i32_1 = arith.constant 0 : i32
    return %c0_i32, %c0_i32_0 : i32, i32
  }
  func.func @transform_3(%arg0: i32) -> (i32, i32) {
    %c0_i32 = arith.constant 0 : i32
    %c0_i32_0 = arith.constant 0 : i32
    %c0_i32_1 = arith.constant 0 : i32
    return %c0_i32, %c0_i32_0 : i32, i32
  }
  func.func @transform_4(%arg0: i32) -> (i32, i32) {
    %c0_i32 = arith.constant 0 : i32
    %c0_i32_0 = arith.constant 0 : i32
    %c0_i32_1 = arith.constant 0 : i32
    return %c0_i32, %c0_i32_0 : i32, i32
  }
  func.func @transform_5(%arg0: i32) -> (i32, i32) {
    %c0_i32 = arith.constant 0 : i32
    %c0_i32_0 = arith.constant 0 : i32
    %c0_i32_1 = arith.constant 0 : i32
    return %c0_i32, %c0_i32_0 : i32, i32
  }
  func.func @transform_6(%arg0: i32) -> (i32, i32) {
    %c0_i32 = arith.constant 0 : i32
    %c0_i32_0 = arith.constant 0 : i32
    %c0_i32_1 = arith.constant 0 : i32
    return %c0_i32, %c0_i32_0 : i32, i32
  }
  func.func @transform_7(%arg0: i32) -> (i32, i32) {
    %c0_i32 = arith.constant 0 : i32
    %c0_i32_0 = arith.constant 0 : i32
    return %arg0, %c0_i32 : i32, i32
  }
}

</mosaic_0001>

<bundles_post_ra>
// kernel: tpu_custom_call.1
= control target key start
LH: loop header
LB: loop body
LE: loop exit
PB: predicated region body
PF: predicated region fallthrough
CT: control target
= control target key end

     0   :  { %12 = vsyncpa [#allocation3], 0  ;;  %s631_s0 = inlined_call_operand.hbm [shape: f32[16,32], index: 0, kind: input, shape index: {}]   ;;  %s632_s1 = inlined_call_operand.hbm [shape: f32[32,32], index: 1, kind: input, shape index: {}]   ;;  %s633_s2 = inlined_call_operand.vmem [shape: f32[1,32], index: 2, kind: input, shape index: {}]   ;;  %s634_s3 = inlined_call_operand.hbm [shape: f32[32,32], index: 3, kind: input, shape index: {}]   ;;  %s635_s4 = inlined_call_operand.vmem [shape: f32[1,32], index: 4, kind: input, shape index: {}]   ;;  %s636_s5 = inlined_call_operand.vmem [shape: f32[1,32], index: 5, kind: input, shape index: {}]   ;;  %s637_s6 = inlined_call_operand.vmem [shape: f32[1,32], index: 6, kind: input, shape index: {}]   ;;  %s638_s7 = inlined_call_operand.hbm [shape: f32[16,32], index: 7, kind: output, shape index: {}]  }
   0x1   :  { %13 = vsyncpa [#allocation6], 0 }
   0x2   :  { %14 = vsyncpa [#allocation4], 0  ;;  %s486_s24 = smov [#allocation5]   ;;  %s487_s26 = smov [#allocation2]  }
   0x3   :  { %s32_s25 = sshll.u32 %s486_s24, 4  ;;  %s20_s27 = sshll.u32 %s487_s26, 4  ;;  %s33_s25 = int_to_ptr.vmem [resolvable:$true] %s32_s25  ;;  %s532_s27 = int_to_ptr.vmem [resolvable:$true] %s20_s27 }
   0x4   :  { %s392_s30 = scalar_lea.hbm %s632_s1, 512 }
   0x5   :  { %p393_p0 = scmp.ne.s32.totalorder %s632_s1, %s392_s30  ;;  %p396_p1 = scmp.lt.u32.totalorder %s392_s30, %s632_s1 }
   0x7   :  { %p398_p2 = pnand %p396_p1, %p393_p0 }
   0x9   :  { %401 = shalt.err (!%p398_p2)
}
   0xa   :  { %s402_s12 = scalar_lea.vmem %s33_s25, 512  ;;  %p407_p4 = scmp.lt.s32.totalorder %s33_s25, %s33_s25 }
   0xb   :  { %p403_p3 = scmp.ne.s32.totalorder %s33_s25, %s402_s12  ;;  %p408_p5 = scmp.lt.s32.totalorder %s402_s12, %s402_s12 }
   0xd   :  { %p409_p6 = por %p408_p5, %p407_p4 }
   0xf   :  { %p410_p7 = pnand %p409_p6, %p403_p3 }
  0x11   :  { %413 = shalt.err (!%p410_p7)
}
  0x12   :  { %s488_s13 = smov 128   ;;  %s489_s14 = smov 8  }
  0x13   :  { %38 = dma.hbm_to_vmem [thread:$0]  %s632_s1, 512, %s33_s25, [#allocation6], %s488_s13, %s488_s13, %s489_s14  }
  0x14   :  { %s414_s19 = scalar_lea.hbm %s631_s0, 256 }
  0x15   :  { %p415_p8 = scmp.ne.s32.totalorder %s631_s0, %s414_s19  ;;  %p418_p9 = scmp.lt.u32.totalorder %s414_s19, %s631_s0 }
  0x17   :  { %p420_p10 = pnand %p418_p9, %p415_p8 }
  0x19   :  { %423 = shalt.err (!%p420_p10)
}
  0x1a   :  { %s424_s24 = scalar_lea.vmem %s532_s27, 256  ;;  %p429_p12 = scmp.lt.s32.totalorder %s532_s27, %s532_s27 }
  0x1b   :  { %p425_p11 = scmp.ne.s32.totalorder %s532_s27, %s424_s24  ;;  %p430_p13 = scmp.lt.s32.totalorder %s424_s24, %s424_s24 }
  0x1d   :  { %p431_p0 = por %p430_p13, %p429_p12 }
  0x1f   :  { %p432_p1 = pnand %p431_p0, %p425_p11 }
  0x21   :  { %435 = shalt.err (!%p432_p1)
}
  0x22   :  { %26 = dma.hbm_to_vmem [thread:$0]  %s631_s0, 256, %s532_s27, [#allocation3], %s488_s13, %s488_s13, %s489_s14  }
  0x23   :  { %s490_s26 = smov [#allocation7]   ;;  %s436_s8 = scalar_lea.hbm %s634_s3, 512 }
  0x24   :  { %s46_s28 = sshll.u32 %s490_s26, 4  ;;  %p437_p2 = scmp.ne.s32.totalorder %s634_s3, %s436_s8  ;;  %s47_s28 = int_to_ptr.vmem [resolvable:$true] %s46_s28 }
  0x25   :  { %p440_p3 = scmp.lt.u32.totalorder %s436_s8, %s634_s3 }
  0x27   :  { %p442_p4 = pnand %p440_p3, %p437_p2 }
  0x29   :  { %445 = shalt.err (!%p442_p4)
}
  0x2a   :  { %s446_s15 = scalar_lea.vmem %s47_s28, 512  ;;  %p451_p6 = scmp.lt.s32.totalorder %s47_s28, %s47_s28 }
  0x2b   :  { %p447_p5 = scmp.ne.s32.totalorder %s47_s28, %s446_s15  ;;  %p452_p7 = scmp.lt.s32.totalorder %s446_s15, %s446_s15 }
  0x2d   :  { %p453_p8 = por %p452_p7, %p451_p6 }
  0x2f   :  { %p454_p9 = pnand %p453_p8, %p447_p5 }
  0x31   :  { %457 = shalt.err (!%p454_p9)
}
  0x32   :  { %52 = dma.hbm_to_vmem [thread:$0]  %s634_s3, 512, %s47_s28, [#allocation6], %s488_s13, %s488_s13, %s489_s14  }
  0x33   :  { %480 = dma.done.wait [#allocation3], 256  }
  0x34   :  { %481 = vsyncadd [#allocation3], 4294967040 }
  0x35   :  { %482 = dma.done.wait [#allocation6], 1024  }
  0x36   :  { %483 = vsyncadd [#allocation6], 4294966272  ;;  %vm70_vm0 = vcmask 261120   ;;  %v584_v0 = vld [vmem:[#allocation2] sm:$0xff]  ;;  %v586_v1 = vld [vmem:[#allocation2 + $0x8] sm:$0xff]  ;;  %s491_s21 = smov [#allocation8]  }
  0x37   :  { %v71_v2 = vsel %vm70_vm0, %v584_v0, 0.0  ;;  %v74_v3 = vsel %vm70_vm0, %v586_v1, 0.0  ;;  %v116_v14 = vld [vmem:[#allocation5] sm:$0xff]  ;;  %v117_v15 = vld [vmem:[#allocation5 + $0x8] sm:$0xff]  ;;  %v118_v16 = vld [vmem:[#allocation5 + $0x10] sm:$0xff]  ;;  %s311_s22 = sshll.u32 %s491_s21, 4  ;;  %s312_s22 = int_to_ptr.vmem [resolvable:$true] %s311_s22 }
  0x38   :  { %72 = vadd.xlane.f32.xlu0 %v71_v2  ;;  %v366_v17 = vpack.c.bf16 %v117_v15, %v116_v14  ;;  %v119_v18 = vld [vmem:[#allocation5 + $0x18] sm:$0xff]  ;;  %v210_v20 = vld [vmem:[#allocation7] sm:$0xff]  ;;  %v211_v21 = vld [vmem:[#allocation7 + $0x8] sm:$0xff]  ;;  %p463_p11 = scmp.lt.s32.totalorder %s312_s22, %s312_s22 }
  0x39   :  { %v370_v19 = vpack.c.bf16 %v119_v18, %v118_v16  ;;  %v374_v22 = vpack.c.bf16 %v211_v21, %v210_v20  ;;  %v324_v30 = vld [vmem:[%s636_s5] ss:$0 sm:$0xff]  ;;  %v213_v40 = vld [vmem:[#allocation7 + $0x18] sm:$0xff] }
  0x3a   :  { %367 = vmatprep.subr.bf16.mxu0 %v366_v17  ;;  %v325_v32 = vld [vmem:[%s637_s6] ss:$0 sm:$0xff] }
  0x3b   :  { %369 = vmatpush3.bf16.msra.mxu0 %v366_v17  ;;  %375 = vmatprep.subr.bf16.mxu1 %v374_v22  ;;  %v212_v39 = vld [vmem:[#allocation7 + $0x10] sm:$0xff] }
  0x3c   :  { %75 = vadd.xlane.f32.xlu0 %v74_v3  ;;  %371 = vmatprep.subr.bf16.mxu0 %v370_v19  ;;  %v378_v41 = vpack.c.bf16 %v213_v40, %v212_v39  ;;  %v326_v42 = vld [vmem:[%s633_s2] ss:$0 sm:$0xff]  ;;  %s458_s2 = scalar_lea.vmem %s312_s22, 256 }
  0x3d   :  { %377 = vmatpush3.bf16.msra.mxu1 %v374_v22  ;;  %v329_v49 = vld [vmem:[%s635_s4] ss:$0 sm:$0xff]  ;;  %p459_p10 = scmp.ne.s32.totalorder %s312_s22, %s458_s2  ;;  %p464_p12 = scmp.lt.s32.totalorder %s458_s2, %s458_s2 }
  0x3e   :  { %379 = vmatprep.subr.bf16.mxu1 %v378_v41 }
  0x3f   :  { %373 = vmatpush3.bf16.msra.mxu0 %v370_v19  ;;  %p465_p13 = por %p464_p12, %p463_p11 }
  0x41   :  { %381 = vmatpush3.bf16.msra.mxu1 %v378_v41  ;;  %p466_p0 = pnand %p465_p13, %p459_p10 }
  0xc5   :  { %v73_v4 = vpop.xlane.xlu0 %72 }
  0xc6   :  { %v78_v5 = vmul.f32 0.03125, %v73_v4 }
  0xc8   :  { %v80_v6 = vsub.f32 %v584_v0, %v78_v5 }
  0xc9   :  { %v76_v7 = vpop.xlane.xlu0 %75 }
  0xca   :  { %v79_v8 = vmul.f32 0.03125, %v76_v7  ;;  %v82_v9 = vmul.f32 %v80_v6, %v80_v6 }
  0xcc   :  { %v81_v10 = vsub.f32 %v586_v1, %v79_v8  ;;  %v84_v11 = vsel %vm70_vm0, %v82_v9, 0.0 }
  0xcd   :  { %85 = vadd.xlane.f32.xlu1 %v84_v11 }
  0xce   :  { %v83_v12 = vmul.f32 %v81_v10, %v81_v10 }
  0xd0   :  { %v87_v13 = vsel %vm70_vm0, %v83_v12, 0.0 }
  0xd1   :  { %88 = vadd.xlane.f32.xlu1 %v87_v13 }
 0x15a   :  { %v86_v23 = vpop.xlane.xlu1 %85 }
 0x15b   :  { %v90_v24 = vmul.f32 0.03125, %v86_v23 }
 0x15d   :  { %v92_v25 = vadd.f32 1e-05, %v90_v24 }
 0x15e   :  { %v89_v26 = vpop.xlane.xlu1 %88 }
 0x15f   :  { %388 = vrsqrt.f32 %v92_v25  ;;  %v91_v27 = vmul.f32 0.03125, %v89_v26 }
 0x161   :  { %v93_v28 = vadd.f32 1e-05, %v91_v27 }
 0x163   :  { %390 = vrsqrt.f32 %v93_v28 }
 0x169   :  { %v389_v29 = vpop.eup %388 }
 0x16a   :  { %v96_v31 = vmul.f32 %v389_v29, %v80_v6 }
 0x16c   :  { %v105_v33 = vmul.f32 %v324_v30, %v96_v31 }
 0x16d   :  { %v391_v34 = vpop.eup %390 }
 0x16e   :  { %v97_v35 = vmul.f32 %v391_v34, %v81_v10  ;;  %v114_v36 = vadd.f32 %v325_v32, %v105_v33 }
 0x170   :  { %v106_v37 = vmul.f32 %v324_v30, %v97_v35  ;;  %352 = vmatprep.mubr.msk.f32.mxu0 %vm70_vm0, %v114_v36 }
 0x172   :  { %v115_v38 = vadd.f32 %v325_v32, %v106_v37 }
 0x174   :  { %353 = vmatmul.mubr.msk.f32.vlgmr.msra.gmra.mrb[0].mxu0 %vm70_vm0, %v115_v38 }
 0x247   :  { %v354_v43 = vpop.f32.mrb[0].mxu0 }
 0x248   :  { %v205_v44 = vadd.f32 %v354_v43, %v326_v42  ;;  %v199_v45 = vpop.f32.mrb[1].mxu0 }
 0x249   :  { %v200_v46 = vadd.f32 %v326_v42, %v199_v45 }
 0x24a   :  { %v209_v48 = vmax.f32 %v205_v44, 0.0 }
 0x24b   :  { %v208_v47 = vmax.f32 %v200_v46, 0.0 }
 0x24d   :  { %363 = vmatprep.mubr.msk.f32.mxu1 %vm70_vm0, %v208_v47 }
 0x24e   :  { %364 = vmatmul.mubr.msk.f32.vlgmr.msra.gmra.mrb[0].mxu1 %vm70_vm0, %v209_v48 }
 0x321   :  { %v365_v50 = vpop.f32.mrb[0].mxu1 }
 0x322   :  { %v299_v51 = vadd.f32 %v365_v50, %v329_v49  ;;  %v293_v52 = vpop.f32.mrb[1].mxu1 }
 0x323   :  { %v294_v53 = vadd.f32 %v329_v49, %v293_v52 }
 0x324   :  { %v303_v54 = vadd.f32 %v299_v51, %v586_v1 }
 0x325   :  { %v302_v55 = vadd.f32 %v294_v53, %v584_v0 }
 0x326   :  { %305 = vst.msk [vmem:[#allocation8 + $0x8] sm:$0xff] %vm70_vm0, %v303_v54 }
 0x327   :  { %304 = vst.msk [vmem:[#allocation8] sm:$0xff] %vm70_vm0, %v302_v55 }
 0x328   :  { %469 = shalt.err (!%p466_p0)
}
 0x329   :  { %s470_s24 = scalar_lea.hbm %s638_s7, 256 }
 0x32a   :  { %p471_p1 = scmp.ne.s32.totalorder %s638_s7, %s470_s24  ;;  %p474_p2 = scmp.lt.u32.totalorder %s470_s24, %s638_s7 }
 0x32c   :  { %p476_p3 = pnand %p474_p2, %p471_p1 }
 0x32e   :  { %479 = shalt.err (!%p476_p3)
}
 0x32f   :  { %317 = dma.vmem_to_hbm [thread:$0]  %s312_s22, 256, %s638_s7, [#allocation4], %s488_s13, %s488_s13, %s489_s14  }
 0x330   :  { %484 = dma.done.wait [#allocation4], 256  }
 0x331   :  { %485 = vsyncadd [#allocation4], 4294967040 }
 0x332   :  { %321 = vsyncpa [#allocation3], 1 }
 0x333   :  { %322 = vsyncpa [#allocation6], 1 }
 0x334   :  { %323 = vsyncpa [#allocation4], 1 }

</bundles_post_ra>
